<compile_context>
chip_gen: v5e
topology: v5e:2x2
jax: 0.10.0
libtpu: 0.0.40
codegen_flags: <defaults>
</compile_context>

<pallas_src>
import functools

import jax
import jax.numpy as jnp
from jax import lax
from jax.experimental import pallas as pl
from jax.experimental.pallas import tpu as pltpu


def _round_up(x: int, m: int) -> int:
    return (x + m - 1) // m * m


def _vmem_budget_bytes() -> int:
    """Per-chip VMEM budget (physical capacity minus Mosaic scratch headroom)."""
    cap = 64 << 20  # conservative fallback (v7x-like: 64 MiB per TensorCore)
    try:
        cap = int(getattr(pltpu.get_tpu_info(), "vmem_capacity_bytes", cap))
    except Exception:
        pass
    return max(24 << 20, min(cap - (8 << 20), int(cap * 0.85)))


def _tile_vmem_bytes(tm, tn, tk, in_bpe, out_bpe, in_bufs=2):
    return (in_bufs * (tm * tk + tk * tn) * in_bpe   # pipelined x / w tiles
            + 2 * tm * tn * out_bpe                  # double-buffered out tile
            + tm * tn * 4                            # f32 accumulator scratch
            + 2 * tn * 4)                            # bias tile double buffer


def select_tiles(M, N, C, *, compute_dtype=jnp.bfloat16, out_dtype=jnp.float32,
                 tm=None, tn=None, tk=None, input_buffers=2):
    """Choose (tm, tn, tk, vmem_budget) per chip / problem.

    tn, tk depend only on (N, C, dtypes) so `pack_weight` and `fp4_linear`
    always agree on the packed weight layout.
    """
    in_bpe = jnp.dtype(compute_dtype).itemsize
    out_bpe = jnp.dtype(out_dtype).itemsize
    budget = _vmem_budget_bytes()
    big_vmem = budget >= (96 << 20)          # v5e/v6e (128 MiB) vs v7x (64 MiB/TC)

    tm_def = tm if tm is not None else (2048 if big_vmem else 1024)
    tn_def = tn if tn is not None else (2048 if big_vmem else 1024)
    tk_def = tk if tk is not None else 512   # keep tk >= 512 (v5e acc-RMW note)

    # Graceful shrink (instead of a compile-time VMEM failure) until it fits.
    while (_tile_vmem_bytes(tm_def, tn_def, tk_def, in_bpe, out_bpe,
                            input_buffers) > budget
           and (tm_def > 256 or tn_def > 256 or tk_def > 256)):
        if tn_def >= tm_def and tn_def > 256:
            tn_def //= 2
        elif tm_def > 256:
            tm_def //= 2
        else:
            tk_def //= 2

    # Clamp to (alignment-rounded) problem size so small dims don't over-pad.
    mp16 = _round_up(max(M, 1), 16)    # bf16-native sublane tile is (16, 128)
    np128 = _round_up(max(N, 1), 128)
    kp128 = _round_up(max(C, 1), 128)
    tm_e = min(tm_def, mp16)
    tn_e = min(tn_def, np128)
    tk_e = min(tk_def, kp128)

    # Moderate-M collapse: make the i-axis a single block so W streams exactly
    # once, but only if it fits VMEM and >=2 j-blocks remain (v7x megacore).
    if tm is None and mp16 > tm_e and mp16 <= 4 * tm_def:
        gn = _round_up(np128, tn_e) // tn_e
        if gn >= 2 and _tile_vmem_bytes(mp16, tn_e, tk_e, in_bpe, out_bpe,
                                        input_buffers) <= budget:
            tm_e = mp16

    return tm_e, tn_e, tk_e, budget


def pack_weight(weight, *, compute_dtype=jnp.bfloat16, out_dtype=jnp.float32,
                tn=None, tk=None, input_buffers=2):
    """One-time weight prep: (N, C) f32 -> (Kp, Np) compute_dtype, padded.

    Call once and pass the result to fp4_linear(weight_is_packed=True,
    n_features=N) with the SAME dtype/tile options to avoid re-casting,
    re-transposing and re-padding the weight on every forward call.
    """
    N, C = weight.shape
    _, tn_e, tk_e, _ = select_tiles(16, N, C, compute_dtype=compute_dtype,
                                    out_dtype=out_dtype, tn=tn, tk=tk,
                                    input_buffers=input_buffers)
    Np = _round_up(N, tn_e)
    Kp = _round_up(C, tk_e)
    w = weight.T.astype(compute_dtype)           # (C, N): MXU-native K x N
    if (Kp, Np) != (C, N):
        w = jnp.pad(w, ((0, Kp - C), (0, Np - N)))
    return w


def _fp4_linear_kernel_bias(x_ref, w_ref, b_ref, o_ref, acc_ref):
    k = pl.program_id(2)
    prod = jnp.dot(x_ref[...], w_ref[...], preferred_element_type=jnp.float32)

    @pl.when(k == 0)
    def _init():
        acc_ref[...] = prod            # first partial product: skip zero + add

    @pl.when(k != 0)
    def _accumulate():
        acc_ref[...] += prod

    @pl.when(k == pl.num_programs(2) - 1)
    def _finalize():
        o_ref[...] = (acc_ref[...] + b_ref[...]).astype(o_ref.dtype)


def _fp4_linear_kernel_nobias(x_ref, w_ref, o_ref, acc_ref):
    k = pl.program_id(2)
    prod = jnp.dot(x_ref[...], w_ref[...], preferred_element_type=jnp.float32)

    @pl.when(k == 0)
    def _init():
        acc_ref[...] = prod

    @pl.when(k != 0)
    def _accumulate():
        acc_ref[...] += prod

    @pl.when(k == pl.num_programs(2) - 1)
    def _finalize():
        o_ref[...] = acc_ref[...].astype(o_ref.dtype)


@functools.partial(jax.jit, static_argnames=(
    "tm", "tn", "tk", "compute_dtype", "out_dtype", "weight_is_packed",
    "n_features", "input_buffers"))
def fp4_linear(x, weight, bias=None, *, tm=None, tn=None, tk=None,
               compute_dtype=jnp.bfloat16, out_dtype=None,
               weight_is_packed=False, n_features=None, input_buffers=2):
    """Pallas equivalent of FP4Linear.forward: (A,B,C) @ (N,C).T (+ bias).

    compute_dtype=jnp.float32 gives bit-closer parity with the f32 PyTorch
    module; out_dtype=jnp.bfloat16 halves output writeback / VMEM if the
    consumer accepts bf16.
    """
    A, B, C = x.shape
    M = A * B
    if weight_is_packed:
        if n_features is None:
            raise ValueError("n_features is required when weight_is_packed=True")
        N = int(n_features)
    else:
        N, Cw = weight.shape
        if Cw != C:
            raise ValueError(f"weight feature dim {Cw} != input feature dim {C}")
    out_dtype = x.dtype if out_dtype is None else out_dtype

    tm_e, tn_e, tk_e, budget = select_tiles(
        M, N, C, compute_dtype=compute_dtype, out_dtype=out_dtype,
        tm=tm, tn=tn, tk=tk, input_buffers=input_buffers)

    Mp = _round_up(M, tm_e)
    Np = _round_up(N, tn_e)
    Kp = _round_up(C, tk_e)

    x2 = x.reshape(M, C).astype(compute_dtype)
    if (Mp, Kp) != (M, C):
        x2 = jnp.pad(x2, ((0, Mp - M), (0, Kp - C)))

    if weight_is_packed:
        w = weight
        if w.shape != (Kp, Np):
            raise ValueError(
                f"packed weight shape {w.shape} != expected {(Kp, Np)}; "
                "pack_weight() must use the same dtype/tile options")
        if w.dtype != jnp.dtype(compute_dtype):
            raise ValueError("packed weight dtype must match compute_dtype")
    else:
        # TODO(synk): for repeated forwards with a fixed weight, hoist this via
        # pack_weight() so the f32 weight is not re-read/cast/padded per call.
        w = weight.T.astype(compute_dtype)      # (C, N): MXU-native K x N rhs
        if (Kp, Np) != (C, N):
            w = jnp.pad(w, ((0, Kp - C), (0, Np - N)))

    grid = (Mp // tm_e, Np // tn_e, Kp // tk_e)
    gm, gn, gk = grid
    in_bpe = jnp.dtype(compute_dtype).itemsize
    out_bpe = jnp.dtype(out_dtype).itemsize

    compiler_params = pltpu.CompilerParams(
        dimension_semantics=("parallel", "parallel", "arbitrary"),
        vmem_limit_bytes=int(budget),
    )
    cost_estimate = pl.CostEstimate(
        flops=2 * Mp * Np * Kp,
        transcendentals=0,
        # Actual schedule: x is streamed once per j-block, w once per i-block.
        bytes_accessed=(gn * Mp * Kp + gm * Kp * Np) * in_bpe
        + Mp * Np * out_bpe
        + (Np * 4 if bias is not None else 0),
    )

    spec_kwargs = {}
    if input_buffers > 2:
        spec_kwargs = dict(pipeline_mode=pl.Buffered(input_buffers))
    x_spec = pl.BlockSpec((tm_e, tk_e), lambda i, j, k: (i, k), **spec_kwargs)
    w_spec = pl.BlockSpec((tk_e, tn_e), lambda i, j, k: (k, j), **spec_kwargs)
    o_spec = pl.BlockSpec((tm_e, tn_e), lambda i, j, k: (i, j))
    scratch = [pltpu.VMEM((tm_e, tn_e), jnp.float32)]

    if bias is not None:
        b2 = bias.astype(jnp.float32).reshape(1, N)
        if Np != N:
            b2 = jnp.pad(b2, ((0, 0), (0, Np - N)))
        b_spec = pl.BlockSpec((1, tn_e), lambda i, j, k: (0, j))
        out = pl.pallas_call(
            _fp4_linear_kernel_bias,
            out_shape=jax.ShapeDtypeStruct((Mp, Np), out_dtype),
            grid=grid,
            in_specs=[x_spec, w_spec, b_spec],
            out_specs=o_spec,
            scratch_shapes=scratch,
            compiler_params=compiler_params,
            cost_estimate=cost_estimate,
        )(x2, w, b2)
    else:
        out = pl.pallas_call(
            _fp4_linear_kernel_nobias,
            out_shape=jax.ShapeDtypeStruct((Mp, Np), out_dtype),
            grid=grid,
            in_specs=[x_spec, w_spec],
            out_specs=o_spec,
            scratch_shapes=scratch,
            compiler_params=compiler_params,
            cost_estimate=cost_estimate,
        )(x2, w)

    return out[:M, :N].reshape(A, B, N)


def _reference(x, weight, bias, compute_dtype=jnp.bfloat16):
    """Pure-JAX reference using the same operand-rounding recipe."""
    A, B, C = x.shape
    xb = x.reshape(A * B, C).astype(compute_dtype).astype(jnp.float32)
    wb = weight.astype(compute_dtype).astype(jnp.float32)
    out = jnp.einsum("mk,nk->mn", xb, wb, precision=lax.Precision.HIGHEST)
    if bias is not None:
        out = out + bias.astype(jnp.float32)
    return out.reshape(A, B, -1)


if __name__ == "__main__":
    key = jax.random.PRNGKey(0)
    k1, k2, k3, k4, k5, k6 = jax.random.split(key, 6)

    # --- Test 1: small shapes consistent with (A, B, C) @ (N, C).T (+ bias) ---
    A, B, C, N = 2, 8, 32, 16
    x = jax.random.normal(k1, (A, B, C), dtype=jnp.float32)
    weight = jax.random.normal(k2, (N, C), dtype=jnp.float32)
    bias = jax.random.normal(k3, (N,), dtype=jnp.float32)

    out = jax.block_until_ready(fp4_linear(x, weight, bias))
    assert out.shape == (A, B, N) and out.dtype == x.dtype
    ref = _reference(x, weight, bias)
    assert jnp.allclose(out, ref, atol=1e-3, rtol=1e-3), "bias path mismatch"

    out_nb = jax.block_until_ready(fp4_linear(x, weight, None))
    ref_nb = _reference(x, weight, None)
    assert jnp.allclose(out_nb, ref_nb, atol=1e-3, rtol=1e-3), "no-bias mismatch"

    # bf16 output option (halves writeback + output VMEM).
    out_b16 = jax.block_until_ready(
        fp4_linear(x, weight, bias, out_dtype=jnp.bfloat16))
    assert out_b16.dtype == jnp.bfloat16
    assert jnp.allclose(out_b16.astype(jnp.float32), ref, atol=2e-2, rtol=2e-2)

    # --- Test 2: ragged shapes + K accumulation (grid k > 1) + packed weight ---
    A2, B2, C2, N2 = 3, 40, 640, 200
    x2 = jax.random.normal(k4, (A2, B2, C2), dtype=jnp.float32)
    weight2 = jax.random.normal(k5, (N2, C2), dtype=jnp.float32) * 0.1
    bias2 = jax.random.normal(k6, (N2,), dtype=jnp.float32)

    out2 = jax.block_until_ready(fp4_linear(x2, weight2, bias2))
    assert out2.shape == (A2, B2, N2)
    ref2 = _reference(x2, weight2, bias2)
    assert jnp.allclose(out2, ref2, atol=1e-2, rtol=1e-2), "ragged/K-acc mismatch"

    # Pre-packed (transposed/cast/padded once) weight path.
    w_packed = pack_weight(weight2)
    out2p = jax.block_until_ready(
        fp4_linear(x2, w_packed, bias2, weight_is_packed=True, n_features=N2))
    assert jnp.allclose(out2p, out2, atol=1e-5, rtol=1e-5), "packed-path mismatch"

    print("KERNEL_OK")
</pallas_src>

<mosaic_0001>
module attributes {stable_mosaic.version = 11 : i64} {
  func.func @_fp4_linear_kernel_bias(%arg0: i32, %arg1: i32, %arg2: i32, %arg3: memref<16x128xbf16, #tpu.memory_space<vmem>>, %arg4: memref<128x128xbf16, #tpu.memory_space<vmem>>, %arg5: memref<1x128xf32, #tpu.memory_space<vmem>>, %arg6: memref<16x128xf32, #tpu.memory_space<vmem>>, %arg7: memref<16x128xf32, #tpu.memory_space<vmem>>) attributes {dimension_semantics = [#tpu.dimension_semantics<parallel>, #tpu.dimension_semantics<parallel>, #tpu.dimension_semantics<arbitrary>], iteration_bounds = array<i64: 1, 1, 1>, scalar_prefetch = 0 : i64, scratch_operands = 1 : i64, tpu.core_type = #tpu.core_type<tc>, window_params = [{transform_indices = @transform_0, window_bounds = array<i64: 16, 128>}, {transform_indices = @transform_1, window_bounds = array<i64: 128, 128>}, {transform_indices = @transform_2, window_bounds = array<i64: 1, 128>}, {transform_indices = @transform_3, window_bounds = array<i64: 16, 128>}]} {
    %c0 = arith.constant 0 : index
    %c0_0 = arith.constant 0 : index
    %0 = vector.load %arg3[%c0, %c0_0] : memref<16x128xbf16, #tpu.memory_space<vmem>>, vector<16x128xbf16>
    %c0_1 = arith.constant 0 : index
    %c0_2 = arith.constant 0 : index
    %1 = vector.load %arg4[%c0_1, %c0_2] : memref<128x128xbf16, #tpu.memory_space<vmem>>, vector<128x128xbf16>
    %cst = arith.constant dense<0.000000e+00> : vector<16x128xf32>
    %2 = tpu.matmul %0, %1, %cst {dimension_numbers = #tpu.dot_dimension_numbers<[1], [0], [0], [1], [0, 0, 1, 1], [], []>} : vector<16x128xbf16>, vector<128x128xbf16>, vector<16x128xf32> -> vector<16x128xf32>
    %c0_i32 = arith.constant 0 : i32
    %3 = arith.cmpi eq, %arg2, %c0_i32 : i32
    %4 = arith.extui %3 : i1 to i32
    %c0_i32_3 = arith.constant 0 : i32
    %5 = arith.cmpi ne, %4, %c0_i32_3 : i32
    scf.if %5 {
      %c0_8 = arith.constant 0 : index
      %c0_9 = arith.constant 0 : index
      %12 = vector.load %arg7[%c0_8, %c0_9] : memref<16x128xf32, #tpu.memory_space<vmem>>, vector<16x128xf32>
      tpu.vector_store %arg7[%c0_8, %c0_9], %2 {strides = array<i32>} : memref<16x128xf32, #tpu.memory_space<vmem>>, vector<16x128xf32>,
    } else {
    }
    %c0_i32_4 = arith.constant 0 : i32
    %6 = arith.cmpi ne, %arg2, %c0_i32_4 : i32
    %7 = arith.extui %6 : i1 to i32
    %c0_i32_5 = arith.constant 0 : i32
    %8 = arith.cmpi ne, %7, %c0_i32_5 : i32
    scf.if %8 {
      %c0_8 = arith.constant 0 : index
      %c0_9 = arith.constant 0 : index
      %12 = vector.load %arg7[%c0_8, %c0_9] : memref<16x128xf32, #tpu.memory_space<vmem>>, vector<16x128xf32>
      %13 = arith.addf %12, %2 : vector<16x128xf32>
      %c0_10 = arith.constant 0 : index
      %c0_11 = arith.constant 0 : index
      %14 = vector.load %arg7[%c0_10, %c0_11] : memref<16x128xf32, #tpu.memory_space<vmem>>, vector<16x128xf32>
      tpu.vector_store %arg7[%c0_10, %c0_11], %13 {strides = array<i32>} : memref<16x128xf32, #tpu.memory_space<vmem>>, vector<16x128xf32>,
    } else {
    }
    %c0_i32_6 = arith.constant 0 : i32
    %9 = arith.cmpi eq, %arg2, %c0_i32_6 : i32
    %10 = arith.extui %9 : i1 to i32
    %c0_i32_7 = arith.constant 0 : i32
    %11 = arith.cmpi ne, %10, %c0_i32_7 : i32
    scf.if %11 {
      %c0_8 = arith.constant 0 : index
      %c0_9 = arith.constant 0 : index
      %12 = vector.load %arg7[%c0_8, %c0_9] : memref<16x128xf32, #tpu.memory_space<vmem>>, vector<16x128xf32>
      %c0_10 = arith.constant 0 : index
      %c0_11 = arith.constant 0 : index
      %13 = vector.load %arg5[%c0_10, %c0_11] : memref<1x128xf32, #tpu.memory_space<vmem>>, vector<1x128xf32>
      %14 = vector.broadcast %13 : vector<1x128xf32> to vector<16x128xf32>
      %15 = arith.addf %12, %14 : vector<16x128xf32>
      %c0_12 = arith.constant 0 : index
      %c0_13 = arith.constant 0 : index
      %16 = vector.load %arg6[%c0_12, %c0_13] : memref<16x128xf32, #tpu.memory_space<vmem>>, vector<16x128xf32>
      tpu.vector_store %arg6[%c0_12, %c0_13], %15 {strides = array<i32>} : memref<16x128xf32, #tpu.memory_space<vmem>>, vector<16x128xf32>,
    } else {
    }
    return
  }
  func.func @transform_0(%arg0: i32, %arg1: i32, %arg2: i32) -> (i32, i32) {
    %c0_i32 = arith.constant 0 : i32
    return %arg0, %arg2 : i32, i32
  }
  func.func @transform_1(%arg0: i32, %arg1: i32, %arg2: i32) -> (i32, i32) {
    %c0_i32 = arith.constant 0 : i32
    return %arg2, %arg1 : i32, i32
  }
  func.func @transform_2(%arg0: i32, %arg1: i32, %arg2: i32) -> (i32, i32) {
    %c0_i32 = arith.constant 0 : i32
    %c0_i32_0 = arith.constant 0 : i32
    return %c0_i32, %arg1 : i32, i32
  }
  func.func @transform_3(%arg0: i32, %arg1: i32, %arg2: i32) -> (i32, i32) {
    %c0_i32 = arith.constant 0 : i32
    return %arg0, %arg1 : i32, i32
  }
}

</mosaic_0001>

<bundles_post_ra>
// kernel: fp4_linear.1
= control target key start
LH: loop header
LB: loop body
LE: loop exit
PB: predicated region body
PF: predicated region fallthrough
CT: control target
= control target key end

     0   :  { %s235_s1 = inlined_call_operand.vmem [shape: bf16[128,128], index: 1, kind: input, shape index: {}]   ;;  %s236_s2 = inlined_call_operand.vmem [shape: f32[1,128], index: 2, kind: input, shape index: {}]   ;;  %s237_s0 = inlined_call_operand.vmem [shape: bf16[16,128], index: 0, kind: input, shape index: {}]   ;;  %s238_s3 = inlined_call_operand.vmem [shape: f32[16,128], index: 3, kind: output, shape index: {}]  }
   0x1   :  { %v177_v0 = vld [vmem:[%s235_s1 + $0x38] sm:$0xff]  ;;  %v176_v1 = vld [vmem:[%s235_s1 + $0x30] sm:$0xff]  ;;  %v175_v2 = vld [vmem:[%s235_s1 + $0x28] sm:$0xff] }
   0x2   :  { %86 = vmatpush.bf16.msra.mxu0 %v177_v0  ;;  %v174_v3 = vld [vmem:[%s235_s1 + $0x20] sm:$0xff]  ;;  %v173_v4 = vld [vmem:[%s235_s1 + $0x18] sm:$0xff]  ;;  %v172_v5 = vld [vmem:[%s235_s1 + $0x10] sm:$0xff] }
   0x3   :  { %v171_v6 = vld [vmem:[%s235_s1 + $0x8] sm:$0xff]  ;;  %v170_v7 = vld [vmem:[%s235_s1] sm:$0xff] }
   0x4   :  { %v169_v8 = vld [vmem:[%s237_s0] sm:$0xff] }
   0x5   :  { %v178_v9 = vld [vmem:[%s236_s2] ss:$0 sm:$0xff] }
   0x6   :  { %87 = vmatpush.bf16.msra.mxu0 %v176_v1 }
   0xa   :  { %88 = vmatpush.bf16.msra.mxu0 %v175_v2 }
   0xe   :  { %89 = vmatpush.bf16.msra.mxu0 %v174_v3 }
  0x12   :  { %90 = vmatpush.bf16.msra.mxu0 %v173_v4 }
  0x16   :  { %91 = vmatpush.bf16.msra.mxu0 %v172_v5 }
  0x1a   :  { %92 = vmatpush.bf16.msra.mxu0 %v171_v6 }
  0x1e   :  { %93 = vmatpush.bf16.msra.mxu0 %v170_v7 }
  0x21   :  { %94 = vmatmul.bf16.vlgmr.msra.gmra.mxu0 %v169_v8 }
  0x9e   :  { %v95_v10 = vpop.f32.mrf.mxu0 }
  0x9f   :  { %v125_v11 = vadd.f32 %v178_v9, %v95_v10 }
  0xa1   :  { %127 = vst [vmem:[%s238_s3] sm:$0xff] %v125_v11 }
  0xa6   :  { %v97_v12 = vpop.f32.mrf.mxu0 }
  0xa7   :  { %v126_v13 = vadd.f32 %v178_v9, %v97_v12 }
  0xa9   :  { %128 = vst [vmem:[%s238_s3 + $0x8] sm:$0xff] %v126_v13 }

</bundles_post_ra>
